<compile_context>
chip_gen: v7x
topology: tpu7x:2x2x1
jax: 0.10.0
libtpu: 0.0.40
codegen_flags: <defaults>
</compile_context>

<pallas_src>
import jax
import jax.numpy as jnp
from jax.experimental import pallas as pl
from jax.experimental.pallas import tpu as pltpu


def _round_up(x, m):
    return (x + m - 1) // m * m


def _make_kernel(tb):
    def kernel(rows_ref, hs_hbm, w_ref, b_ref, out_ref, gather_sc, sem):
        # rows_ref  : [B_pad] i32 in SMEM (scalar prefetch) -- flat row ids into hs2d
        # hs_hbm    : [B*S, H] raw HBM ref (memory_space=pl.ANY), gathered manually
        # w_ref     : [H, tn]  weight tile (input dtype), resident per label tile
        # b_ref     : [1, tn]  bias tile (f32)
        # out_ref   : [TB, tn] lane-dense output tile
        # gather_sc : [TB, H]  VMEM scratch holding the gathered cls-token rows
        # sem       : DMA semaphores, one per row in the tile
        bt = pl.program_id(0)
        j = pl.program_id(1)

        # Gather this batch tile's classification-token rows exactly once
        # (first label-tile step); all TB row-DMAs are started back-to-back
        # before the first wait so they overlap each other.
        @pl.when(j == 0)
        def _gather():
            copies = []
            for r in range(tb):
                row = rows_ref[bt * tb + r]
                cp = pltpu.make_async_copy(
                    hs_hbm.at[pl.ds(row, 1), :],
                    gather_sc.at[pl.ds(r, 1), :],
                    sem.at[r],
                )
                cp.start()
                copies.append(cp)
            for cp in copies:
                cp.wait()

        # first_dropout = Identity (p = 0.0)
        proj = jnp.dot(gather_sc[...], w_ref[...],
                       preferred_element_type=jnp.float32)
        out_ref[...] = jnp.tanh(proj + b_ref[...]).astype(out_ref.dtype)
        # last_dropout = Identity (p = 0.0)

    return kernel


def sequence_summary(hidden_states, cls_index, weight, bias, *, batch_tile=None):
    """hidden_states [B,S,H], cls_index [B] i32, weight [H,C], bias [C] -> [B,C]."""
    B, S, H = hidden_states.shape
    C = weight.shape[1]
    dtype = hidden_states.dtype

    # Batch tile: multiple of 8 sublanes. 128 is a good default (fills the v5e
    # MXU); use batch_tile=256 on v6e/v7x for large-batch shapes.
    if batch_tile is None:
        TB = min(128, _round_up(max(B, 1), 8))
    else:
        TB = _round_up(batch_tile, 8)
    B_pad = _round_up(B, TB)

    # Lane-dense label axis, tiled so the resident weight tile stays small.
    Cpad = _round_up(C, 128)
    tn = 128
    for cand in (1024, 512, 256, 128):
        if Cpad % cand == 0:
            tn = cand
            break
    n_ct = Cpad // tn

    # Scalar/index prep (wrapper-side layout plumbing, not compute):
    cls = jnp.clip(cls_index.astype(jnp.int32), 0, S - 1)       # robust vs OOB index
    rows = jnp.arange(B, dtype=jnp.int32) * S + cls             # flat row id in [B*S, H]
    rows = jnp.pad(rows, (0, B_pad - B))                        # padded entries gather row 0

    hs2d = hidden_states.reshape(B * S, H)                      # free, contiguous
    w_pad = jnp.pad(weight.astype(dtype), ((0, 0), (0, Cpad - C)))
    b_pad = jnp.pad(bias.astype(jnp.float32), (0, Cpad - C)).reshape(1, Cpad)

    grid = (B_pad // TB, n_ct)

    # VMEM budget: only raise the scoped limit when the shapes actually need it.
    itemsize = jnp.dtype(dtype).itemsize
    vmem_est = (2 * H * tn * itemsize          # double-buffered weight tile
                + 2 * tn * 4                   # bias tile
                + 2 * TB * tn * itemsize       # output tile
                + TB * H * itemsize            # gather scratch
                + (4 << 20))                   # headroom
    compiler_kwargs = dict(dimension_semantics=("parallel", "arbitrary"))
    if vmem_est > (16 << 20):
        compiler_kwargs["vmem_limit_bytes"] = int(min(vmem_est, 96 << 20))

    out = pl.pallas_call(
        _make_kernel(TB),
        out_shape=jax.ShapeDtypeStruct((B_pad, Cpad), dtype),
        grid_spec=pltpu.PrefetchScalarGridSpec(
            num_scalar_prefetch=1,
            grid=grid,
            in_specs=[
                # Raw HBM ref; rows are gathered manually inside the kernel.
                pl.BlockSpec(memory_space=pl.ANY),
                # Projection weight / bias tiles (constant across the batch axis).
                pl.BlockSpec((H, tn), lambda bt, j, rows_sm: (0, j)),
                pl.BlockSpec((1, tn), lambda bt, j, rows_sm: (0, j)),
            ],
            out_specs=pl.BlockSpec((TB, tn), lambda bt, j, rows_sm: (bt, j)),
            scratch_shapes=[
                pltpu.VMEM((TB, H), dtype),
                pltpu.SemaphoreType.DMA((TB,)),
            ],
        ),
        compiler_params=pltpu.CompilerParams(**compiler_kwargs),
    )(rows, hs2d, w_pad, b_pad)

    # Slice only the dims that were actually padded (keep lane-dense when possible).
    if B_pad != B:
        out = out[:B]
    if Cpad != C:
        out = out[:, :C]
    return out


def sequence_summary_ref(hidden_states, cls_index, weight, bias):
    """Pure-JAX reference mirroring the PyTorch forward (cls_index path)."""
    gathered = jnp.take_along_axis(
        hidden_states, cls_index[:, None, None].astype(jnp.int32), axis=1
    ).squeeze(1)
    return jnp.tanh(gathered @ weight + bias[None, :])


if __name__ == "__main__":
    # Small shapes consistent with the module's forward:
    B, S, H, NUM_LABELS = 2, 8, 32, 8

    key = jax.random.PRNGKey(0)
    k_hs, k_w, k_b, k_cls = jax.random.split(key, 4)

    hidden_states = jax.random.normal(k_hs, (B, S, H), dtype=jnp.float32)

    # nn.Linear(H, NUM_LABELS) init (kaiming-uniform-style bounds), deterministic.
    bound = 1.0 / jnp.sqrt(H)
    weight = jax.random.uniform(k_w, (H, NUM_LABELS), jnp.float32, -bound, bound)
    bias = jax.random.uniform(k_b, (NUM_LABELS,), jnp.float32, -bound, bound)

    # cls_index per batch element; default (None in torch) would be S - 1.
    cls_index = jax.random.randint(k_cls, (B,), 0, S, dtype=jnp.int32)

    out = sequence_summary(hidden_states, cls_index, weight, bias)
    out = jax.block_until_ready(out)

    ref = sequence_summary_ref(hidden_states, cls_index, weight, bias)
    assert out.shape == (B, NUM_LABELS)
    assert jnp.allclose(out, ref, atol=1e-5, rtol=1e-5), "mismatch vs reference"

    # Also check the "last"-token default path (cls_index = S - 1).
    out_last = sequence_summary(
        hidden_states, jnp.full((B,), S - 1, jnp.int32), weight, bias
    )
    ref_last = jnp.tanh(hidden_states[:, -1] @ weight + bias[None, :])
    assert jnp.allclose(jax.block_until_ready(out_last), ref_last, atol=1e-5, rtol=1e-5)

    # TODO(synk): "mean"/"attn" summary_type variants and nonzero dropout are not
    # implemented here (this kernel realizes the cls_index/last, p=0 configuration).
    print("KERNEL_OK")
</pallas_src>

<mosaic_0001>
module attributes {stable_mosaic.version = 11 : i64} {
  func.func @kernel(%arg0: i32, %arg1: i32, %arg2: memref<8xi32, #tpu.memory_space<smem>>, %arg3: memref<16x32xf32, #tpu.memory_space<any>>, %arg4: memref<32x128xf32, #tpu.memory_space<vmem>>, %arg5: memref<1x128xf32, #tpu.memory_space<vmem>>, %arg6: memref<8x128xf32, #tpu.memory_space<vmem>>, %arg7: memref<8x32xf32, #tpu.memory_space<vmem>>, %arg8: memref<8x!tpu.dma_semaphore, #tpu.memory_space<semaphore_mem>>) attributes {dimension_semantics = [#tpu.dimension_semantics<parallel>, #tpu.dimension_semantics<arbitrary>], iteration_bounds = array<i64: 1, 1>, scalar_prefetch = 1 : i64, scratch_operands = 2 : i64, tpu.core_type = #tpu.core_type<tc>, window_params = [{}, {transform_indices = @transform_1, window_bounds = array<i64: 32, 128>}, {transform_indices = @transform_2, window_bounds = array<i64: 1, 128>}, {transform_indices = @transform_3, window_bounds = array<i64: 8, 128>}]} {
    %c0_i32 = arith.constant 0 : i32
    %0 = arith.cmpi eq, %arg1, %c0_i32 : i32
    %1 = arith.extui %0 : i1 to i32
    %c0_i32_0 = arith.constant 0 : i32
    %2 = arith.cmpi ne, %1, %c0_i32_0 : i32
    scf.if %2 {
      %c8_i32 = arith.constant 8 : i32
      %11 = arith.muli %arg0, %c8_i32 : i32
      %c0_i32_8 = arith.constant 0 : i32
      %12 = arith.addi %11, %c0_i32_8 : i32
      %13 = arith.index_cast %12 : i32 to index
      %14 = memref.load %arg2[%13] : memref<8xi32, #tpu.memory_space<smem>>
      %c0_i32_9 = arith.constant 0 : i32
      %c0_i32_10 = arith.constant 0 : i32
      %15 = tpu.memref_slice %arg3[%14, %c0_i32_10] : memref<16x32xf32, #tpu.memory_space<any>> -> memref<1x32xf32, #tpu.memory_space<any>>
      %c0_i32_11 = arith.constant 0 : i32
      %c0_i32_12 = arith.constant 0 : i32
      %16 = tpu.memref_slice %arg7[%c0_i32_11, %c0_i32_12] : memref<8x32xf32, #tpu.memory_space<vmem>> -> memref<1x32xf32, #tpu.memory_space<vmem>>
      %17 = tpu.memref_slice %arg8[%c0_i32_9] : memref<8x!tpu.dma_semaphore, #tpu.memory_space<semaphore_mem>> -> memref<1x!tpu.dma_semaphore, #tpu.memory_space<semaphore_mem>>
      %18 = tpu.memref_squeeze %17 : memref<1x!tpu.dma_semaphore, #tpu.memory_space<semaphore_mem>> -> memref<!tpu.dma_semaphore, #tpu.memory_space<semaphore_mem>>
      tpu.enqueue_dma source(%15 : memref<1x32xf32, #tpu.memory_space<any>>) target(%16 : memref<1x32xf32, #tpu.memory_space<vmem>>) target_semaphore(%18 : memref<!tpu.dma_semaphore, #tpu.memory_space<semaphore_mem>>)
      %c8_i32_13 = arith.constant 8 : i32
      %19 = arith.muli %arg0, %c8_i32_13 : i32
      %c1_i32 = arith.constant 1 : i32
      %20 = arith.addi %19, %c1_i32 : i32
      %21 = arith.index_cast %20 : i32 to index
      %22 = memref.load %arg2[%21] : memref<8xi32, #tpu.memory_space<smem>>
      %c1_i32_14 = arith.constant 1 : i32
      %c0_i32_15 = arith.constant 0 : i32
      %23 = tpu.memref_slice %arg3[%22, %c0_i32_15] : memref<16x32xf32, #tpu.memory_space<any>> -> memref<1x32xf32, #tpu.memory_space<any>>
      %c1_i32_16 = arith.constant 1 : i32
      %c0_i32_17 = arith.constant 0 : i32
      %24 = tpu.memref_slice %arg7[%c1_i32_16, %c0_i32_17] : memref<8x32xf32, #tpu.memory_space<vmem>> -> memref<1x32xf32, #tpu.memory_space<vmem>>
      %25 = tpu.memref_slice %arg8[%c1_i32_14] : memref<8x!tpu.dma_semaphore, #tpu.memory_space<semaphore_mem>> -> memref<1x!tpu.dma_semaphore, #tpu.memory_space<semaphore_mem>>
      %26 = tpu.memref_squeeze %25 : memref<1x!tpu.dma_semaphore, #tpu.memory_space<semaphore_mem>> -> memref<!tpu.dma_semaphore, #tpu.memory_space<semaphore_mem>>
      tpu.enqueue_dma source(%23 : memref<1x32xf32, #tpu.memory_space<any>>) target(%24 : memref<1x32xf32, #tpu.memory_space<vmem>>) target_semaphore(%26 : memref<!tpu.dma_semaphore, #tpu.memory_space<semaphore_mem>>)
      %c8_i32_18 = arith.constant 8 : i32
      %27 = arith.muli %arg0, %c8_i32_18 : i32
      %c2_i32 = arith.constant 2 : i32
      %28 = arith.addi %27, %c2_i32 : i32
      %29 = arith.index_cast %28 : i32 to index
      %30 = memref.load %arg2[%29] : memref<8xi32, #tpu.memory_space<smem>>
      %c2_i32_19 = arith.constant 2 : i32
      %c0_i32_20 = arith.constant 0 : i32
      %31 = tpu.memref_slice %arg3[%30, %c0_i32_20] : memref<16x32xf32, #tpu.memory_space<any>> -> memref<1x32xf32, #tpu.memory_space<any>>
      %c2_i32_21 = arith.constant 2 : i32
      %c0_i32_22 = arith.constant 0 : i32
      %32 = tpu.memref_slice %arg7[%c2_i32_21, %c0_i32_22] : memref<8x32xf32, #tpu.memory_space<vmem>> -> memref<1x32xf32, #tpu.memory_space<vmem>>
      %33 = tpu.memref_slice %arg8[%c2_i32_19] : memref<8x!tpu.dma_semaphore, #tpu.memory_space<semaphore_mem>> -> memref<1x!tpu.dma_semaphore, #tpu.memory_space<semaphore_mem>>
      %34 = tpu.memref_squeeze %33 : memref<1x!tpu.dma_semaphore, #tpu.memory_space<semaphore_mem>> -> memref<!tpu.dma_semaphore, #tpu.memory_space<semaphore_mem>>
      tpu.enqueue_dma source(%31 : memref<1x32xf32, #tpu.memory_space<any>>) target(%32 : memref<1x32xf32, #tpu.memory_space<vmem>>) target_semaphore(%34 : memref<!tpu.dma_semaphore, #tpu.memory_space<semaphore_mem>>)
      %c8_i32_23 = arith.constant 8 : i32
      %35 = arith.muli %arg0, %c8_i32_23 : i32
      %c3_i32 = arith.constant 3 : i32
      %36 = arith.addi %35, %c3_i32 : i32
      %37 = arith.index_cast %36 : i32 to index
      %38 = memref.load %arg2[%37] : memref<8xi32, #tpu.memory_space<smem>>
      %c3_i32_24 = arith.constant 3 : i32
      %c0_i32_25 = arith.constant 0 : i32
      %39 = tpu.memref_slice %arg3[%38, %c0_i32_25] : memref<16x32xf32, #tpu.memory_space<any>> -> memref<1x32xf32, #tpu.memory_space<any>>
      %c3_i32_26 = arith.constant 3 : i32
      %c0_i32_27 = arith.constant 0 : i32
      %40 = tpu.memref_slice %arg7[%c3_i32_26, %c0_i32_27] : memref<8x32xf32, #tpu.memory_space<vmem>> -> memref<1x32xf32, #tpu.memory_space<vmem>>
      %41 = tpu.memref_slice %arg8[%c3_i32_24] : memref<8x!tpu.dma_semaphore, #tpu.memory_space<semaphore_mem>> -> memref<1x!tpu.dma_semaphore, #tpu.memory_space<semaphore_mem>>
      %42 = tpu.memref_squeeze %41 : memref<1x!tpu.dma_semaphore, #tpu.memory_space<semaphore_mem>> -> memref<!tpu.dma_semaphore, #tpu.memory_space<semaphore_mem>>
      tpu.enqueue_dma source(%39 : memref<1x32xf32, #tpu.memory_space<any>>) target(%40 : memref<1x32xf32, #tpu.memory_space<vmem>>) target_semaphore(%42 : memref<!tpu.dma_semaphore, #tpu.memory_space<semaphore_mem>>)
      %c8_i32_28 = arith.constant 8 : i32
      %43 = arith.muli %arg0, %c8_i32_28 : i32
      %c4_i32 = arith.constant 4 : i32
      %44 = arith.addi %43, %c4_i32 : i32
      %45 = arith.index_cast %44 : i32 to index
      %46 = memref.load %arg2[%45] : memref<8xi32, #tpu.memory_space<smem>>
      %c4_i32_29 = arith.constant 4 : i32
      %c0_i32_30 = arith.constant 0 : i32
      %47 = tpu.memref_slice %arg3[%46, %c0_i32_30] : memref<16x32xf32, #tpu.memory_space<any>> -> memref<1x32xf32, #tpu.memory_space<any>>
      %c4_i32_31 = arith.constant 4 : i32
      %c0_i32_32 = arith.constant 0 : i32
      %48 = tpu.memref_slice %arg7[%c4_i32_31, %c0_i32_32] : memref<8x32xf32, #tpu.memory_space<vmem>> -> memref<1x32xf32, #tpu.memory_space<vmem>>
      %49 = tpu.memref_slice %arg8[%c4_i32_29] : memref<8x!tpu.dma_semaphore, #tpu.memory_space<semaphore_mem>> -> memref<1x!tpu.dma_semaphore, #tpu.memory_space<semaphore_mem>>
      %50 = tpu.memref_squeeze %49 : memref<1x!tpu.dma_semaphore, #tpu.memory_space<semaphore_mem>> -> memref<!tpu.dma_semaphore, #tpu.memory_space<semaphore_mem>>
      tpu.enqueue_dma source(%47 : memref<1x32xf32, #tpu.memory_space<any>>) target(%48 : memref<1x32xf32, #tpu.memory_space<vmem>>) target_semaphore(%50 : memref<!tpu.dma_semaphore, #tpu.memory_space<semaphore_mem>>)
      %c8_i32_33 = arith.constant 8 : i32
      %51 = arith.muli %arg0, %c8_i32_33 : i32
      %c5_i32 = arith.constant 5 : i32
      %52 = arith.addi %51, %c5_i32 : i32
      %53 = arith.index_cast %52 : i32 to index
      %54 = memref.load %arg2[%53] : memref<8xi32, #tpu.memory_space<smem>>
      %c5_i32_34 = arith.constant 5 : i32
      %c0_i32_35 = arith.constant 0 : i32
      %55 = tpu.memref_slice %arg3[%54, %c0_i32_35] : memref<16x32xf32, #tpu.memory_space<any>> -> memref<1x32xf32, #tpu.memory_space<any>>
      %c5_i32_36 = arith.constant 5 : i32
      %c0_i32_37 = arith.constant 0 : i32
      %56 = tpu.memref_slice %arg7[%c5_i32_36, %c0_i32_37] : memref<8x32xf32, #tpu.memory_space<vmem>> -> memref<1x32xf32, #tpu.memory_space<vmem>>
      %57 = tpu.memref_slice %arg8[%c5_i32_34] : memref<8x!tpu.dma_semaphore, #tpu.memory_space<semaphore_mem>> -> memref<1x!tpu.dma_semaphore, #tpu.memory_space<semaphore_mem>>
      %58 = tpu.memref_squeeze %57 : memref<1x!tpu.dma_semaphore, #tpu.memory_space<semaphore_mem>> -> memref<!tpu.dma_semaphore, #tpu.memory_space<semaphore_mem>>
      tpu.enqueue_dma source(%55 : memref<1x32xf32, #tpu.memory_space<any>>) target(%56 : memref<1x32xf32, #tpu.memory_space<vmem>>) target_semaphore(%58 : memref<!tpu.dma_semaphore, #tpu.memory_space<semaphore_mem>>)
      %c8_i32_38 = arith.constant 8 : i32
      %59 = arith.muli %arg0, %c8_i32_38 : i32
      %c6_i32 = arith.constant 6 : i32
      %60 = arith.addi %59, %c6_i32 : i32
      %61 = arith.index_cast %60 : i32 to index
      %62 = memref.load %arg2[%61] : memref<8xi32, #tpu.memory_space<smem>>
      %c6_i32_39 = arith.constant 6 : i32
      %c0_i32_40 = arith.constant 0 : i32
      %63 = tpu.memref_slice %arg3[%62, %c0_i32_40] : memref<16x32xf32, #tpu.memory_space<any>> -> memref<1x32xf32, #tpu.memory_space<any>>
      %c6_i32_41 = arith.constant 6 : i32
      %c0_i32_42 = arith.constant 0 : i32
      %64 = tpu.memref_slice %arg7[%c6_i32_41, %c0_i32_42] : memref<8x32xf32, #tpu.memory_space<vmem>> -> memref<1x32xf32, #tpu.memory_space<vmem>>
      %65 = tpu.memref_slice %arg8[%c6_i32_39] : memref<8x!tpu.dma_semaphore, #tpu.memory_space<semaphore_mem>> -> memref<1x!tpu.dma_semaphore, #tpu.memory_space<semaphore_mem>>
      %66 = tpu.memref_squeeze %65 : memref<1x!tpu.dma_semaphore, #tpu.memory_space<semaphore_mem>> -> memref<!tpu.dma_semaphore, #tpu.memory_space<semaphore_mem>>
      tpu.enqueue_dma source(%63 : memref<1x32xf32, #tpu.memory_space<any>>) target(%64 : memref<1x32xf32, #tpu.memory_space<vmem>>) target_semaphore(%66 : memref<!tpu.dma_semaphore, #tpu.memory_space<semaphore_mem>>)
      %c8_i32_43 = arith.constant 8 : i32
      %67 = arith.muli %arg0, %c8_i32_43 : i32
      %c7_i32 = arith.constant 7 : i32
      %68 = arith.addi %67, %c7_i32 : i32
      %69 = arith.index_cast %68 : i32 to index
      %70 = memref.load %arg2[%69] : memref<8xi32, #tpu.memory_space<smem>>
      %c7_i32_44 = arith.constant 7 : i32
      %c0_i32_45 = arith.constant 0 : i32
      %71 = tpu.memref_slice %arg3[%70, %c0_i32_45] : memref<16x32xf32, #tpu.memory_space<any>> -> memref<1x32xf32, #tpu.memory_space<any>>
      %c7_i32_46 = arith.constant 7 : i32
      %c0_i32_47 = arith.constant 0 : i32
      %72 = tpu.memref_slice %arg7[%c7_i32_46, %c0_i32_47] : memref<8x32xf32, #tpu.memory_space<vmem>> -> memref<1x32xf32, #tpu.memory_space<vmem>>
      %73 = tpu.memref_slice %arg8[%c7_i32_44] : memref<8x!tpu.dma_semaphore, #tpu.memory_space<semaphore_mem>> -> memref<1x!tpu.dma_semaphore, #tpu.memory_space<semaphore_mem>>
      %74 = tpu.memref_squeeze %73 : memref<1x!tpu.dma_semaphore, #tpu.memory_space<semaphore_mem>> -> memref<!tpu.dma_semaphore, #tpu.memory_space<semaphore_mem>>
      tpu.enqueue_dma source(%71 : memref<1x32xf32, #tpu.memory_space<any>>) target(%72 : memref<1x32xf32, #tpu.memory_space<vmem>>) target_semaphore(%74 : memref<!tpu.dma_semaphore, #tpu.memory_space<semaphore_mem>>)
      %c0_i32_48 = arith.constant 0 : i32
      %c0_i32_49 = arith.constant 0 : i32
      %75 = tpu.memref_slice %arg3[%14, %c0_i32_49] : memref<16x32xf32, #tpu.memory_space<any>> -> memref<1x32xf32, #tpu.memory_space<any>>
      %c0_i32_50 = arith.constant 0 : i32
      %c0_i32_51 = arith.constant 0 : i32
      %76 = tpu.memref_slice %arg7[%c0_i32_50, %c0_i32_51] : memref<8x32xf32, #tpu.memory_space<vmem>> -> memref<1x32xf32, #tpu.memory_space<vmem>>
      %77 = tpu.memref_slice %arg8[%c0_i32_48] : memref<8x!tpu.dma_semaphore, #tpu.memory_space<semaphore_mem>> -> memref<1x!tpu.dma_semaphore, #tpu.memory_space<semaphore_mem>>
      %78 = tpu.memref_squeeze %77 : memref<1x!tpu.dma_semaphore, #tpu.memory_space<semaphore_mem>> -> memref<!tpu.dma_semaphore, #tpu.memory_space<semaphore_mem>>
      tpu.wait_dma2 semaphore(%78 : memref<!tpu.dma_semaphore, #tpu.memory_space<semaphore_mem>>) src(%75 : memref<1x32xf32, #tpu.memory_space<any>>) dst(%76 : memref<1x32xf32, #tpu.memory_space<vmem>>)
      %c1_i32_52 = arith.constant 1 : i32
      %c0_i32_53 = arith.constant 0 : i32
      %79 = tpu.memref_slice %arg3[%22, %c0_i32_53] : memref<16x32xf32, #tpu.memory_space<any>> -> memref<1x32xf32, #tpu.memory_space<any>>
      %c1_i32_54 = arith.constant 1 : i32
      %c0_i32_55 = arith.constant 0 : i32
      %80 = tpu.memref_slice %arg7[%c1_i32_54, %c0_i32_55] : memref<8x32xf32, #tpu.memory_space<vmem>> -> memref<1x32xf32, #tpu.memory_space<vmem>>
      %81 = tpu.memref_slice %arg8[%c1_i32_52] : memref<8x!tpu.dma_semaphore, #tpu.memory_space<semaphore_mem>> -> memref<1x!tpu.dma_semaphore, #tpu.memory_space<semaphore_mem>>
      %82 = tpu.memref_squeeze %81 : memref<1x!tpu.dma_semaphore, #tpu.memory_space<semaphore_mem>> -> memref<!tpu.dma_semaphore, #tpu.memory_space<semaphore_mem>>
      tpu.wait_dma2 semaphore(%82 : memref<!tpu.dma_semaphore, #tpu.memory_space<semaphore_mem>>) src(%79 : memref<1x32xf32, #tpu.memory_space<any>>) dst(%80 : memref<1x32xf32, #tpu.memory_space<vmem>>)
      %c2_i32_56 = arith.constant 2 : i32
      %c0_i32_57 = arith.constant 0 : i32
      %83 = tpu.memref_slice %arg3[%30, %c0_i32_57] : memref<16x32xf32, #tpu.memory_space<any>> -> memref<1x32xf32, #tpu.memory_space<any>>
      %c2_i32_58 = arith.constant 2 : i32
      %c0_i32_59 = arith.constant 0 : i32
      %84 = tpu.memref_slice %arg7[%c2_i32_58, %c0_i32_59] : memref<8x32xf32, #tpu.memory_space<vmem>> -> memref<1x32xf32, #tpu.memory_space<vmem>>
      %85 = tpu.memref_slice %arg8[%c2_i32_56] : memref<8x!tpu.dma_semaphore, #tpu.memory_space<semaphore_mem>> -> memref<1x!tpu.dma_semaphore, #tpu.memory_space<semaphore_mem>>
      %86 = tpu.memref_squeeze %85 : memref<1x!tpu.dma_semaphore, #tpu.memory_space<semaphore_mem>> -> memref<!tpu.dma_semaphore, #tpu.memory_space<semaphore_mem>>
      tpu.wait_dma2 semaphore(%86 : memref<!tpu.dma_semaphore, #tpu.memory_space<semaphore_mem>>) src(%83 : memref<1x32xf32, #tpu.memory_space<any>>) dst(%84 : memref<1x32xf32, #tpu.memory_space<vmem>>)
      %c3_i32_60 = arith.constant 3 : i32
      %c0_i32_61 = arith.constant 0 : i32
      %87 = tpu.memref_slice %arg3[%38, %c0_i32_61] : memref<16x32xf32, #tpu.memory_space<any>> -> memref<1x32xf32, #tpu.memory_space<any>>
      %c3_i32_62 = arith.constant 3 : i32
      %c0_i32_63 = arith.constant 0 : i32
      %88 = tpu.memref_slice %arg7[%c3_i32_62, %c0_i32_63] : memref<8x32xf32, #tpu.memory_space<vmem>> -> memref<1x32xf32, #tpu.memory_space<vmem>>
      %89 = tpu.memref_slice %arg8[%c3_i32_60] : memref<8x!tpu.dma_semaphore, #tpu.memory_space<semaphore_mem>> -> memref<1x!tpu.dma_semaphore, #tpu.memory_space<semaphore_mem>>
      %90 = tpu.memref_squeeze %89 : memref<1x!tpu.dma_semaphore, #tpu.memory_space<semaphore_mem>> -> memref<!tpu.dma_semaphore, #tpu.memory_space<semaphore_mem>>
      tpu.wait_dma2 semaphore(%90 : memref<!tpu.dma_semaphore, #tpu.memory_space<semaphore_mem>>) src(%87 : memref<1x32xf32, #tpu.memory_space<any>>) dst(%88 : memref<1x32xf32, #tpu.memory_space<vmem>>)
      %c4_i32_64 = arith.constant 4 : i32
      %c0_i32_65 = arith.constant 0 : i32
      %91 = tpu.memref_slice %arg3[%46, %c0_i32_65] : memref<16x32xf32, #tpu.memory_space<any>> -> memref<1x32xf32, #tpu.memory_space<any>>
      %c4_i32_66 = arith.constant 4 : i32
      %c0_i32_67 = arith.constant 0 : i32
      %92 = tpu.memref_slice %arg7[%c4_i32_66, %c0_i32_67] : memref<8x32xf32, #tpu.memory_space<vmem>> -> memref<1x32xf32, #tpu.memory_space<vmem>>
      %93 = tpu.memref_slice %arg8[%c4_i32_64] : memref<8x!tpu.dma_semaphore, #tpu.memory_space<semaphore_mem>> -> memref<1x!tpu.dma_semaphore, #tpu.memory_space<semaphore_mem>>
      %94 = tpu.memref_squeeze %93 : memref<1x!tpu.dma_semaphore, #tpu.memory_space<semaphore_mem>> -> memref<!tpu.dma_semaphore, #tpu.memory_space<semaphore_mem>>
      tpu.wait_dma2 semaphore(%94 : memref<!tpu.dma_semaphore, #tpu.memory_space<semaphore_mem>>) src(%91 : memref<1x32xf32, #tpu.memory_space<any>>) dst(%92 : memref<1x32xf32, #tpu.memory_space<vmem>>)
      %c5_i32_68 = arith.constant 5 : i32
      %c0_i32_69 = arith.constant 0 : i32
      %95 = tpu.memref_slice %arg3[%54, %c0_i32_69] : memref<16x32xf32, #tpu.memory_space<any>> -> memref<1x32xf32, #tpu.memory_space<any>>
      %c5_i32_70 = arith.constant 5 : i32
      %c0_i32_71 = arith.constant 0 : i32
      %96 = tpu.memref_slice %arg7[%c5_i32_70, %c0_i32_71] : memref<8x32xf32, #tpu.memory_space<vmem>> -> memref<1x32xf32, #tpu.memory_space<vmem>>
      %97 = tpu.memref_slice %arg8[%c5_i32_68] : memref<8x!tpu.dma_semaphore, #tpu.memory_space<semaphore_mem>> -> memref<1x!tpu.dma_semaphore, #tpu.memory_space<semaphore_mem>>
      %98 = tpu.memref_squeeze %97 : memref<1x!tpu.dma_semaphore, #tpu.memory_space<semaphore_mem>> -> memref<!tpu.dma_semaphore, #tpu.memory_space<semaphore_mem>>
      tpu.wait_dma2 semaphore(%98 : memref<!tpu.dma_semaphore, #tpu.memory_space<semaphore_mem>>) src(%95 : memref<1x32xf32, #tpu.memory_space<any>>) dst(%96 : memref<1x32xf32, #tpu.memory_space<vmem>>)
      %c6_i32_72 = arith.constant 6 : i32
      %c0_i32_73 = arith.constant 0 : i32
      %99 = tpu.memref_slice %arg3[%62, %c0_i32_73] : memref<16x32xf32, #tpu.memory_space<any>> -> memref<1x32xf32, #tpu.memory_space<any>>
      %c6_i32_74 = arith.constant 6 : i32
      %c0_i32_75 = arith.constant 0 : i32
      %100 = tpu.memref_slice %arg7[%c6_i32_74, %c0_i32_75] : memref<8x32xf32, #tpu.memory_space<vmem>> -> memref<1x32xf32, #tpu.memory_space<vmem>>
      %101 = tpu.memref_slice %arg8[%c6_i32_72] : memref<8x!tpu.dma_semaphore, #tpu.memory_space<semaphore_mem>> -> memref<1x!tpu.dma_semaphore, #tpu.memory_space<semaphore_mem>>
      %102 = tpu.memref_squeeze %101 : memref<1x!tpu.dma_semaphore, #tpu.memory_space<semaphore_mem>> -> memref<!tpu.dma_semaphore, #tpu.memory_space<semaphore_mem>>
      tpu.wait_dma2 semaphore(%102 : memref<!tpu.dma_semaphore, #tpu.memory_space<semaphore_mem>>) src(%99 : memref<1x32xf32, #tpu.memory_space<any>>) dst(%100 : memref<1x32xf32, #tpu.memory_space<vmem>>)
      %c7_i32_76 = arith.constant 7 : i32
      %c0_i32_77 = arith.constant 0 : i32
      %103 = tpu.memref_slice %arg3[%70, %c0_i32_77] : memref<16x32xf32, #tpu.memory_space<any>> -> memref<1x32xf32, #tpu.memory_space<any>>
      %c7_i32_78 = arith.constant 7 : i32
      %c0_i32_79 = arith.constant 0 : i32
      %104 = tpu.memref_slice %arg7[%c7_i32_78, %c0_i32_79] : memref<8x32xf32, #tpu.memory_space<vmem>> -> memref<1x32xf32, #tpu.memory_space<vmem>>
      %105 = tpu.memref_slice %arg8[%c7_i32_76] : memref<8x!tpu.dma_semaphore, #tpu.memory_space<semaphore_mem>> -> memref<1x!tpu.dma_semaphore, #tpu.memory_space<semaphore_mem>>
      %106 = tpu.memref_squeeze %105 : memref<1x!tpu.dma_semaphore, #tpu.memory_space<semaphore_mem>> -> memref<!tpu.dma_semaphore, #tpu.memory_space<semaphore_mem>>
      tpu.wait_dma2 semaphore(%106 : memref<!tpu.dma_semaphore, #tpu.memory_space<semaphore_mem>>) src(%103 : memref<1x32xf32, #tpu.memory_space<any>>) dst(%104 : memref<1x32xf32, #tpu.memory_space<vmem>>)
    } else {
    }
    %c0 = arith.constant 0 : index
    %c0_1 = arith.constant 0 : index
    %3 = vector.load %arg7[%c0, %c0_1] : memref<8x32xf32, #tpu.memory_space<vmem>>, vector<8x32xf32>
    %c0_2 = arith.constant 0 : index
    %c0_3 = arith.constant 0 : index
    %4 = vector.load %arg4[%c0_2, %c0_3] : memref<32x128xf32, #tpu.memory_space<vmem>>, vector<32x128xf32>
    %cst = arith.constant dense<0.000000e+00> : vector<8x128xf32>
    %5 = tpu.matmul %3, %4, %cst {dimension_numbers = #tpu.dot_dimension_numbers<[1], [0], [0], [1], [0, 0, 1, 1], [], []>} : vector<8x32xf32>, vector<32x128xf32>, vector<8x128xf32> -> vector<8x128xf32>
    %c0_4 = arith.constant 0 : index
    %c0_5 = arith.constant 0 : index
    %6 = vector.load %arg5[%c0_4, %c0_5] : memref<1x128xf32, #tpu.memory_space<vmem>>, vector<1x128xf32>
    %7 = vector.broadcast %6 : vector<1x128xf32> to vector<8x128xf32>
    %8 = arith.addf %5, %7 : vector<8x128xf32>
    %9 = math.tanh %8 : vector<8x128xf32>
    %c0_6 = arith.constant 0 : index
    %c0_7 = arith.constant 0 : index
    %10 = vector.load %arg6[%c0_6, %c0_7] : memref<8x128xf32, #tpu.memory_space<vmem>>, vector<8x128xf32>
    tpu.vector_store %arg6[%c0_6, %c0_7], %9 {strides = array<i32>} : memref<8x128xf32, #tpu.memory_space<vmem>>, vector<8x128xf32>,
    return
  }
  func.func @transform_1(%arg0: i32, %arg1: i32, %arg2: memref<8xi32, #tpu.memory_space<smem>>) -> (i32, i32) {
    %c0_i32 = arith.constant 0 : i32
    %c0_i32_0 = arith.constant 0 : i32
    return %c0_i32, %arg1 : i32, i32
  }
  func.func @transform_2(%arg0: i32, %arg1: i32, %arg2: memref<8xi32, #tpu.memory_space<smem>>) -> (i32, i32) {
    %c0_i32 = arith.constant 0 : i32
    %c0_i32_0 = arith.constant 0 : i32
    return %c0_i32, %arg1 : i32, i32
  }
  func.func @transform_3(%arg0: i32, %arg1: i32, %arg2: memref<8xi32, #tpu.memory_space<smem>>) -> (i32, i32) {
    %c0_i32 = arith.constant 0 : i32
    return %arg0, %arg1 : i32, i32
  }
}

</mosaic_0001>

<bundles_post_ra>
// kernel: tpu_custom_call.1
= control target key start
LH: loop header
LB: loop body
LE: loop exit
PB: predicated region body
PF: predicated region fallthrough
CT: control target
= control target key end

     0   :  { %s905_s0 = inlined_call_operand.hbm [shape: s32[8], index: 0, kind: input, shape index: {}]   ;;  %s906_s1 = inlined_call_operand.hbm [shape: f32[16,32], index: 1, kind: input, shape index: {}]   ;;  %s907_s2 = inlined_call_operand.hbm [shape: f32[32,128], index: 2, kind: input, shape index: {}]   ;;  %s908_s3 = inlined_call_operand.vmem [shape: f32[1,128], index: 3, kind: input, shape index: {}]   ;;  %s909_s4 = inlined_call_operand.hbm [shape: f32[8,128], index: 4, kind: output, shape index: {}]  }
   0x1   :  { %s426_s17 = scalar_lea.hbm %s905_s0, 16 }
   0x2   :  { %p427_p0 = scmp.ne.s32.totalorder %s905_s0, %s426_s17  ;;  %p430_p1 = scmp.lt.u32.totalorder %s426_s17, %s905_s0 }
   0x4   :  { %p432_p2 = pnand %p430_p1, %p427_p0 }
   0x6   :  { %435 = shalt.err (!%p432_p2)  }
   0x7   :  { %s694_s22 = smov [#allocation5]  }
   0x8   :  { %10 = dma.hbm_to_smem %s905_s0, 16, %s694_s22, [#allocation4] }
   0x9   :  { %672 = dma.done.wait [#allocation4], 16 }
   0xa   :  { %673 = vsyncadd [#allocation4], 4294967280 }
   0xb   :  { %12 = sfence }
   0xc   :  { %13 = vsyncpa [#allocation7], 0 }
   0xd   :  { %14 = vsyncpa [#allocation8], 0  ;;  %s695_s25 = smov [#allocation6]   ;;  %s436_s29 = scalar_lea.hbm %s907_s2, 512 }
   0xe   :  { %s20_s26 = sshll.u32 %s695_s25, 4  ;;  %p437_p3 = scmp.ne.s32.totalorder %s907_s2, %s436_s29  ;;  %s21_s26 = int_to_ptr.vmem [resolvable:$true] %s20_s26 }
   0xf   :  { %p440_p4 = scmp.lt.u32.totalorder %s436_s29, %s907_s2 }
  0x11   :  { %p442_p5 = pnand %p440_p4, %p437_p3 }
  0x13   :  { %445 = shalt.err (!%p442_p5)
}
  0x14   :  { %s446_s0 = scalar_lea.vmem %s21_s26, 512  ;;  %p451_p7 = scmp.lt.s32.totalorder %s21_s26, %s21_s26 }
  0x15   :  { %p447_p6 = scmp.ne.s32.totalorder %s21_s26, %s446_s0  ;;  %p452_p8 = scmp.lt.s32.totalorder %s446_s0, %s446_s0 }
  0x17   :  { %p453_p9 = por %p452_p8, %p451_p7 }
  0x19   :  { %p454_p10 = pnand %p453_p9, %p447_p6 }
  0x1b   :  { %457 = shalt.err (!%p454_p10)
}
  0x1c   :  { %s696_s8 = smov 128   ;;  %s697_s9 = smov 8  }
  0x1d   :  { %26 = dma.hbm_to_vmem [thread:$0]  %s907_s2, 512, %s21_s26, [#allocation7], %s696_s8, %s696_s8, %s697_s9  }
  0x1e   :  { %674 = dma.done.wait [#allocation7], 512  }
  0x1f   :  { %675 = vsyncadd [#allocation7], 4294966784  ;;  %s37_s12 = sld [smem:[#allocation5]]  ;;  %s698_s13 = smov [#allocation2]  }
  0x20   :  { %s47_s14 = sshll.u32 %s698_s13, 4  ;;  %s761_s15 = sld [smem:[#allocation5 + $0x1]]  ;;  %s759_s14 = int_to_ptr.vmem [resolvable:$true] %s47_s14 }
  0x21   :  { %s699_s16 = smov [#allocation2 + $0x1]   ;;  %s763_s18 = sld [smem:[#allocation5 + $0x2]] }
  0x22   :  { %s64_s17 = sshll.u32 %s699_s16, 4  ;;  %s700_s19 = smov [#allocation2 + $0x2]   ;;  %s765_s17 = int_to_ptr.vmem [resolvable:$true] %s64_s17 }
  0x23   :  { %s81_s20 = sshll.u32 %s700_s19, 4  ;;  %s767_s21 = sld [smem:[#allocation5 + $0x3]]  ;;  %s769_s20 = int_to_ptr.vmem [resolvable:$true] %s81_s20 }
  0x24   :  { %s701_s22 = smov [#allocation2 + $0x3]   ;;  %s780_s5 = scalar_lea.hbm %s906_s1, 256 }
  0x25   :  { %s361_s2 = sshll.u32 %s37_s12, 4  ;;  %s771_s23 = sshll.u32 %s701_s22, 4  ;;  %s99_s23 = int_to_ptr.vmem [resolvable:$true] %s771_s23 }
  0x26   :  { %s39_s26 = scalar_lea.hbm %s906_s1, %s361_s2  ;;  %s363_s27 = sshll.u32 %s761_s15, 4 }
  0x27   :  { %s458_s28 = scalar_lea.hbm %s39_s26, 16  ;;  %p461_p12 = scmp.lt.u32.totalorder %s39_s26, %s906_s1 }
  0x28   :  { %p459_p11 = scmp.ne.s32.totalorder %s39_s26, %s458_s28  ;;  %p462_p13 = scmp.lt.u32.totalorder %s780_s5, %s458_s28 }
  0x29   :  { %p464_p1 = scmp.lt.u32.totalorder %s458_s28, %s39_s26 }
  0x2a   :  { %p463_p0 = por %p462_p13, %p461_p12 }
  0x2c   :  { %p465_p2 = por %p464_p1, %p463_p0 }
  0x2e   :  { %p466_p3 = pnand %p465_p2, %p459_p11 }
  0x30   :  { %469 = shalt.err (!%p466_p3)  }
  0x31   :  { %s470_s0 = scalar_lea.vmem %s759_s14, 16  ;;  %s789_s8 = scalar_lea.vmem %s759_s14, 128 }
  0x32   :  { %p471_p4 = scmp.ne.s32.totalorder %s759_s14, %s470_s0  ;;  %p475_p5 = scmp.lt.s32.totalorder %s759_s14, %s759_s14 }
  0x33   :  { %p476_p6 = scmp.lt.s32.totalorder %s789_s8, %s470_s0 }
  0x35   :  { %p477_p7 = por %p476_p6, %p475_p5 }
  0x37   :  { %p478_p8 = pnand %p477_p7, %p471_p4 }
  0x39   :  { %481 = shalt.err (!%p478_p8)  }
  0x3a   :  { %50 = dma.hbm_to_vmem [thread:$0]  %s39_s26, 16, %s759_s14, [#allocation3] }
  0x3b   :  { %s54_s11 = scalar_lea.hbm %s906_s1, %s363_s27  ;;  %s365_s12 = sshll.u32 %s763_s18, 4 }
  0x3c   :  { %s482_s13 = scalar_lea.hbm %s54_s11, 16  ;;  %p485_p10 = scmp.lt.u32.totalorder %s54_s11, %s906_s1 }
  0x3d   :  { %p483_p9 = scmp.ne.s32.totalorder %s54_s11, %s482_s13  ;;  %p486_p11 = scmp.lt.u32.totalorder %s780_s5, %s482_s13 }
  0x3e   :  { %p488_p13 = scmp.lt.u32.totalorder %s482_s13, %s54_s11 }
  0x3f   :  { %p487_p12 = por %p486_p11, %p485_p10 }
  0x41   :  { %p489_p0 = por %p488_p13, %p487_p12 }
  0x43   :  { %p490_p1 = pnand %p489_p0, %p483_p9 }
  0x45   :  { %493 = shalt.err (!%p490_p1)  }
  0x46   :  { %s494_s19 = scalar_lea.vmem %s765_s17, 16  ;;  %p499_p3 = scmp.lt.s32.totalorder %s765_s17, %s759_s14 }
  0x47   :  { %p495_p2 = scmp.ne.s32.totalorder %s765_s17, %s494_s19  ;;  %p500_p4 = scmp.lt.s32.totalorder %s789_s8, %s494_s19 }
  0x49   :  { %p501_p5 = por %p500_p4, %p499_p3 }
  0x4b   :  { %p502_p6 = pnand %p501_p5, %p495_p2 }
  0x4d   :  { %505 = shalt.err (!%p502_p6)  }
  0x4e   :  { %67 = dma.hbm_to_vmem [thread:$0]  %s54_s11, 16, %s765_s17, [#allocation3 + $0x1] }
  0x4f   :  { %s71_s22 = scalar_lea.hbm %s906_s1, %s365_s12  ;;  %s367_s24 = sshll.u32 %s767_s21, 4 }
  0x50   :  { %s506_s25 = scalar_lea.hbm %s71_s22, 16  ;;  %p509_p8 = scmp.lt.u32.totalorder %s71_s22, %s906_s1 }
  0x51   :  { %p507_p7 = scmp.ne.s32.totalorder %s71_s22, %s506_s25  ;;  %p510_p9 = scmp.lt.u32.totalorder %s780_s5, %s506_s25 }
  0x52   :  { %p512_p11 = scmp.lt.u32.totalorder %s506_s25, %s71_s22 }
  0x53   :  { %p511_p10 = por %p510_p9, %p509_p8 }
  0x55   :  { %p513_p12 = por %p512_p11, %p511_p10 }
  0x57   :  { %p514_p13 = pnand %p513_p12, %p507_p7 }
  0x59   :  { %517 = shalt.err (!%p514_p13)  }
  0x5a   :  { %s518_s17 = scalar_lea.vmem %s769_s20, 16  ;;  %p523_p1 = scmp.lt.s32.totalorder %s769_s20, %s759_s14 }
  0x5b   :  { %p519_p0 = scmp.ne.s32.totalorder %s769_s20, %s518_s17  ;;  %p524_p2 = scmp.lt.s32.totalorder %s789_s8, %s518_s17 }
  0x5d   :  { %p525_p3 = por %p524_p2, %p523_p1 }
  0x5f   :  { %p526_p4 = pnand %p525_p3, %p519_p0 }
  0x61   :  { %529 = shalt.err (!%p526_p4)  }
  0x62   :  { %84 = dma.hbm_to_vmem [thread:$0]  %s71_s22, 16, %s769_s20, [#allocation3 + $0x2] }
  0x63   :  { %s88_s29 = scalar_lea.hbm %s906_s1, %s367_s24 }
  0x64   :  { %s530_s30 = scalar_lea.hbm %s88_s29, 16  ;;  %p533_p6 = scmp.lt.u32.totalorder %s88_s29, %s906_s1 }
  0x65   :  { %p531_p5 = scmp.ne.s32.totalorder %s88_s29, %s530_s30  ;;  %p534_p7 = scmp.lt.u32.totalorder %s780_s5, %s530_s30 }
  0x66   :  { %p536_p9 = scmp.lt.u32.totalorder %s530_s30, %s88_s29 }
  0x67   :  { %p535_p8 = por %p534_p7, %p533_p6 }
  0x69   :  { %p537_p10 = por %p536_p9, %p535_p8 }
  0x6b   :  { %p538_p11 = pnand %p537_p10, %p531_p5 }
  0x6d   :  { %541 = shalt.err (!%p538_p11)  }
  0x6e   :  { %s542_s0 = scalar_lea.vmem %s99_s23, 16  ;;  %p547_p13 = scmp.lt.s32.totalorder %s99_s23, %s759_s14 }
  0x6f   :  { %p543_p12 = scmp.ne.s32.totalorder %s99_s23, %s542_s0  ;;  %p548_p0 = scmp.lt.s32.totalorder %s789_s8, %s542_s0 }
  0x71   :  { %p549_p1 = por %p548_p0, %p547_p13 }
  0x73   :  { %p550_p2 = pnand %p549_p1, %p543_p12 }
  0x75   :  { %553 = shalt.err (!%p550_p2)  }
  0x76   :  { %101 = dma.hbm_to_vmem [thread:$0]  %s88_s29, 16, %s99_s23, [#allocation3 + $0x3] }
  0x77   :  { %s368_s20 = sld [smem:[#allocation5 + $0x4]]  ;;  %s702_s9 = smov [#allocation2 + $0x4]  }
  0x78   :  { %s115_s10 = sshll.u32 %s702_s9, 4  ;;  %s833_s11 = sld [smem:[#allocation5 + $0x5]]  ;;  %s116_s10 = int_to_ptr.vmem [resolvable:$true] %s115_s10 }
  0x79   :  { %s703_s12 = smov [#allocation2 + $0x5]   ;;  %s835_s15 = sld [smem:[#allocation5 + $0x6]] }
  0x7a   :  { %s132_s13 = sshll.u32 %s703_s12, 4  ;;  %s704_s16 = smov [#allocation2 + $0x6]   ;;  %s837_s13 = int_to_ptr.vmem [resolvable:$true] %s132_s13 }
  0x7b   :  { %s149_s19 = sshll.u32 %s704_s16, 4  ;;  %s839_s18 = sld [smem:[#allocation5 + $0x7]]  ;;  %s841_s19 = int_to_ptr.vmem [resolvable:$true] %s149_s19 }
  0x7d   :  { %s369_s2 = sshll.u32 %s368_s20, 4 }
  0x7e   :  { %s105_s24 = scalar_lea.hbm %s906_s1, %s369_s2  ;;  %s371_s25 = sshll.u32 %s833_s11, 4 }
  0x7f   :  { %s554_s26 = scalar_lea.hbm %s105_s24, 16  ;;  %p557_p4 = scmp.lt.u32.totalorder %s105_s24, %s906_s1 }
  0x80   :  { %p555_p3 = scmp.ne.s32.totalorder %s105_s24, %s554_s26  ;;  %p558_p5 = scmp.lt.u32.totalorder %s780_s5, %s554_s26 }
  0x81   :  { %p560_p7 = scmp.lt.u32.totalorder %s554_s26, %s105_s24 }
  0x82   :  { %p559_p6 = por %p558_p5, %p557_p4 }
  0x84   :  { %p561_p8 = por %p560_p7, %p559_p6 }
  0x86   :  { %p562_p9 = pnand %p561_p8, %p555_p3 }
  0x88   :  { %565 = shalt.err (!%p562_p9)  }
  0x89   :  { %s566_s21 = scalar_lea.vmem %s116_s10, 16  ;;  %p571_p11 = scmp.lt.s32.totalorder %s116_s10, %s759_s14 }
  0x8a   :  { %p567_p10 = scmp.ne.s32.totalorder %s116_s10, %s566_s21  ;;  %p572_p12 = scmp.lt.s32.totalorder %s789_s8, %s566_s21 }
  0x8c   :  { %p573_p13 = por %p572_p12, %p571_p11 }
  0x8e   :  { %p574_p0 = pnand %p573_p13, %p567_p10 }
  0x90   :  { %577 = shalt.err (!%p574_p0)  }
  0x91   :  { %118 = dma.hbm_to_vmem [thread:$0]  %s105_s24, 16, %s116_s10, [#allocation3 + $0x4] }
  0x92   :  { %s122_s30 = scalar_lea.hbm %s906_s1, %s371_s25  ;;  %s373_s6 = sshll.u32 %s835_s15, 4 }
  0x93   :  { %s578_s7 = scalar_lea.hbm %s122_s30, 16  ;;  %p581_p2 = scmp.lt.u32.totalorder %s122_s30, %s906_s1 }
  0x94   :  { %p579_p1 = scmp.ne.s32.totalorder %s122_s30, %s578_s7  ;;  %p582_p3 = scmp.lt.u32.totalorder %s780_s5, %s578_s7 }
  0x95   :  { %p584_p5 = scmp.lt.u32.totalorder %s578_s7, %s122_s30 }
  0x96   :  { %p583_p4 = por %p582_p3, %p581_p2 }
  0x98   :  { %p585_p6 = por %p584_p5, %p583_p4 }
  0x9a   :  { %p586_p7 = pnand %p585_p6, %p579_p1 }
  0x9c   :  { %589 = shalt.err (!%p586_p7)  }
  0x9d   :  { %s590_s9 = scalar_lea.vmem %s837_s13, 16  ;;  %p595_p9 = scmp.lt.s32.totalorder %s837_s13, %s759_s14 }
  0x9e   :  { %p591_p8 = scmp.ne.s32.totalorder %s837_s13, %s590_s9  ;;  %p596_p10 = scmp.lt.s32.totalorder %s789_s8, %s590_s9 }
  0xa0   :  { %p597_p11 = por %p596_p10, %p595_p9 }
  0xa2   :  { %p598_p12 = pnand %p597_p11, %p591_p8 }
  0xa4   :  { %601 = shalt.err (!%p598_p12)  }
  0xa5   :  { %135 = dma.hbm_to_vmem [thread:$0]  %s122_s30, 16, %s837_s13, [#allocation3 + $0x5] }
  0xa6   :  { %s139_s12 = scalar_lea.hbm %s906_s1, %s373_s6  ;;  %s375_s15 = sshll.u32 %s839_s18, 4 }
  0xa7   :  { %s602_s16 = scalar_lea.hbm %s139_s12, 16  ;;  %p605_p0 = scmp.lt.u32.totalorder %s139_s12, %s906_s1 }
  0xa8   :  { %p603_p13 = scmp.ne.s32.totalorder %s139_s12, %s602_s16  ;;  %p606_p1 = scmp.lt.u32.totalorder %s780_s5, %s602_s16 }
  0xa9   :  { %p608_p3 = scmp.lt.u32.totalorder %s602_s16, %s139_s12 }
  0xaa   :  { %p607_p2 = por %p606_p1, %p605_p0 }
  0xac   :  { %p609_p4 = por %p608_p3, %p607_p2 }
  0xae   :  { %p610_p5 = pnand %p609_p4, %p603_p13 }
  0xb0   :  { %613 = shalt.err (!%p610_p5)  }
  0xb1   :  { %s614_s13 = scalar_lea.vmem %s841_s19, 16  ;;  %p619_p7 = scmp.lt.s32.totalorder %s841_s19, %s759_s14 }
  0xb2   :  { %p615_p6 = scmp.ne.s32.totalorder %s841_s19, %s614_s13  ;;  %p620_p8 = scmp.lt.s32.totalorder %s789_s8, %s614_s13 }
  0xb4   :  { %p621_p9 = por %p620_p8, %p619_p7 }
  0xb6   :  { %p622_p10 = pnand %p621_p9, %p615_p6 }
  0xb8   :  { %625 = shalt.err (!%p622_p10)  }
  0xb9   :  { %152 = dma.hbm_to_vmem [thread:$0]  %s139_s12, 16, %s841_s19, [#allocation3 + $0x6] }
  0xba   :  { %s156_s24 = scalar_lea.hbm %s906_s1, %s375_s15  ;;  %s705_s25 = smov [#allocation2 + $0x7]  }
  0xbb   :  { %s166_s26 = sshll.u32 %s705_s25, 4  ;;  %s626_s27 = scalar_lea.hbm %s156_s24, 16  ;;  %s167_s26 = int_to_ptr.vmem [resolvable:$true] %s166_s26 }
  0xbc   :  { %p627_p11 = scmp.ne.s32.totalorder %s156_s24, %s626_s27  ;;  %p629_p12 = scmp.lt.u32.totalorder %s156_s24, %s906_s1 }
  0xbd   :  { %p630_p13 = scmp.lt.u32.totalorder %s780_s5, %s626_s27  ;;  %p632_p1 = scmp.lt.u32.totalorder %s626_s27, %s156_s24 }
  0xbf   :  { %p631_p0 = por %p630_p13, %p629_p12 }
  0xc1   :  { %p633_p2 = por %p632_p1, %p631_p0 }
  0xc3   :  { %p634_p3 = pnand %p633_p2, %p627_p11 }
  0xc5   :  { %637 = shalt.err (!%p634_p3)  }
  0xc6   :  { %s638_s19 = scalar_lea.vmem %s167_s26, 16  ;;  %p643_p5 = scmp.lt.s32.totalorder %s167_s26, %s759_s14 }
  0xc7   :  { %p639_p4 = scmp.ne.s32.totalorder %s167_s26, %s638_s19  ;;  %p644_p6 = scmp.lt.s32.totalorder %s789_s8, %s638_s19 }
  0xc9   :  { %p645_p7 = por %p644_p6, %p643_p5 }
  0xcb   :  { %p646_p8 = pnand %p645_p7, %p639_p4 }
  0xcd   :  { %649 = shalt.err (!%p646_p8)  }
  0xce   :  { %169 = dma.hbm_to_vmem [thread:$0]  %s156_s24, 16, %s167_s26, [#allocation3 + $0x7] }
  0xcf   :  { %676 = dma.done.wait [#allocation3], 16 }
  0xd0   :  { %677 = vsyncadd [#allocation3], 4294967280 }
  0xd1   :  { %678 = dma.done.wait [#allocation3 + $0x1], 16 }
  0xd2   :  { %679 = vsyncadd [#allocation3 + $0x1], 4294967280 }
  0xd3   :  { %680 = dma.done.wait [#allocation3 + $0x2], 16 }
  0xd4   :  { %681 = vsyncadd [#allocation3 + $0x2], 4294967280 }
  0xd5   :  { %682 = dma.done.wait [#allocation3 + $0x3], 16 }
  0xd6   :  { %683 = vsyncadd [#allocation3 + $0x3], 4294967280 }
  0xd7   :  { %684 = dma.done.wait [#allocation3 + $0x4], 16 }
  0xd8   :  { %685 = vsyncadd [#allocation3 + $0x4], 4294967280 }
  0xd9   :  { %686 = dma.done.wait [#allocation3 + $0x5], 16 }
  0xda   :  { %687 = vsyncadd [#allocation3 + $0x5], 4294967280 }
  0xdb   :  { %688 = dma.done.wait [#allocation3 + $0x6], 16 }
  0xdc   :  { %689 = vsyncadd [#allocation3 + $0x6], 4294967280 }
  0xdd   :  { %690 = dma.done.wait [#allocation3 + $0x7], 16 }
  0xde   :  { %691 = vsyncadd [#allocation3 + $0x7], 4294967280  ;;  %v706_v0 = vmov 0.0|0.0   ;;  %vm707_vm0 = vmmov 0   ;;  %v708_v1 = vmov 0.0   ;;  %v188_v2 = vld [vmem:[#allocation6] sm:$0xff] }
  0xdf   :  { %402 = vmatprep.subr.bf16.mxu0 %v706_v0  ;;  %399 = vmatprep.mubr.msk.f32.mxu0 %vm707_vm0, %v708_v1  ;;  %v189_v3 = vld [vmem:[#allocation6 + $0x8] sm:$0xff]  ;;  %v190_v4 = vld [vmem:[#allocation6 + $0x10] sm:$0xff]  ;;  %v191_v6 = vld [vmem:[#allocation6 + $0x18] sm:$0xff]  ;;  %vm199_vm1 = vcmask 261120   ;;  %s709_s5 = smov [#allocation9]  }
  0xe0   :  { %v403_v5 = vpack.c.bf16 %v189_v3, %v188_v2  ;;  %v406_v7 = vpack.c.bf16 %v191_v6, %v190_v4  ;;  %v187_v8 = vld [vmem:[#allocation2] sm:$0xff]  ;;  %s281_s8 = sshll.u32 %s709_s5, 4  ;;  %s282_s8 = int_to_ptr.vmem [resolvable:$true] %s281_s8 }
  0xe1   :  { %v376_v9 = vld [vmem:[%s908_s3] ss:$0 sm:$0xff]  ;;  %s650_s28 = scalar_lea.vmem %s282_s8, 128  ;;  %p655_p10 = scmp.lt.s32.totalorder %s282_s8, %s282_s8 }
  0xe2   :  { %404 = vmatpush3.bf16.msra.mxu0 %v403_v5  ;;  %p651_p9 = scmp.ne.s32.totalorder %s282_s8, %s650_s28  ;;  %p656_p11 = scmp.lt.s32.totalorder %s650_s28, %s650_s28 }
  0xe3   :  { %405 = vmatprep.subr.bf16.mxu0 %v706_v0 }
  0xe4   :  { %p657_p12 = por %p656_p11, %p655_p10 }
  0xe6   :  { %407 = vmatpush3.bf16.msra.mxu0 %v406_v7  ;;  %p658_p13 = pnand %p657_p12, %p651_p9 }
  0xe9   :  { %400 = vmatmul.mubr.msk.f32.vlgmr.msra.gmra.mrb[0].mxu0 %vm199_vm1, %v187_v8 }
 0x1bc   :  { %v269_v10 = vpop.f32.mrb[0].mxu0 }
 0x1bd   :  { %v270_v11 = vadd.f32 %v376_v9, %v269_v10  ;;  %v401_v12 = vpop.f32.mrb[1].mxu0 }
 0x1bf   :  { %424 = vtanh.f32 %v270_v11 }
 0x1c9   :  { %v425_v13 = vpop.eup %424 }
 0x1ca   :  { %274 = vst [vmem:[#allocation9] sm:$0xff] %v425_v13 }
 0x1cb   :  { %661 = shalt.err (!%p658_p13)
}
 0x1cc   :  { %s662_s3 = scalar_lea.hbm %s909_s4, 128 }
 0x1cd   :  { %p663_p0 = scmp.ne.s32.totalorder %s909_s4, %s662_s3  ;;  %p666_p1 = scmp.lt.u32.totalorder %s662_s3, %s909_s4 }
 0x1cf   :  { %p668_p2 = pnand %p666_p1, %p663_p0 }
 0x1d1   :  { %671 = shalt.err (!%p668_p2)
}
 0x1d2   :  { %284 = dma.vmem_to_hbm [thread:$0]  %s282_s8, 128, %s909_s4, [#allocation8]  }
 0x1d3   :  { %692 = dma.done.wait [#allocation8], 128  }
 0x1d4   :  { %693 = vsyncadd [#allocation8], 4294967168 }
 0x1d5   :  { %288 = vsyncpa [#allocation7], 1 }
 0x1d6   :  { %289 = vsyncpa [#allocation8], 1 }
 0x1d7   :  { %290 = vsyncmov [#allocation3] }
 0x1da   :  { %s291_s11 = vpop.sfrf %290 }
 0x1db   :  { %p378_p3 = scmp.ne.s32.totalorder %s291_s11, 0 }
 0x1dd   :  { %295 = shalt.err (%p378_p3)  }
 0x1de   :  { %297 = vsyncmov [#allocation3 + $0x1] }
 0x1e1   :  { %s298_s12 = vpop.sfrf %297 }
 0x1e2   :  { %p379_p4 = scmp.ne.s32.totalorder %s298_s12, 0 }
 0x1e4   :  { %302 = shalt.err (%p379_p4)  }
 0x1e5   :  { %304 = vsyncmov [#allocation3 + $0x2] }
 0x1e8   :  { %s305_s15 = vpop.sfrf %304 }
 0x1e9   :  { %p380_p5 = scmp.ne.s32.totalorder %s305_s15, 0 }
 0x1eb   :  { %309 = shalt.err (%p380_p5)  }
 0x1ec   :  { %311 = vsyncmov [#allocation3 + $0x3] }
 0x1ef   :  { %s312_s16 = vpop.sfrf %311 }
 0x1f0   :  { %p381_p6 = scmp.ne.s32.totalorder %s312_s16, 0 }
 0x1f2   :  { %316 = shalt.err (%p381_p6)  }
 0x1f3   :  { %318 = vsyncmov [#allocation3 + $0x4] }
 0x1f6   :  { %s319_s4 = vpop.sfrf %318 }
 0x1f7   :  { %p382_p7 = scmp.ne.s32.totalorder %s319_s4, 0 }
 0x1f9   :  { %323 = shalt.err (%p382_p7)  }
 0x1fa   :  { %325 = vsyncmov [#allocation3 + $0x5] }
 0x1fd   :  { %s326_s2 = vpop.sfrf %325 }
 0x1fe   :  { %p383_p8 = scmp.ne.s32.totalorder %s326_s2, 0 }
 0x200   :  { %330 = shalt.err (%p383_p8)  }
 0x201   :  { %332 = vsyncmov [#allocation3 + $0x6] }
 0x204   :  { %s333_s23 = vpop.sfrf %332 }
 0x205   :  { %p384_p9 = scmp.ne.s32.totalorder %s333_s23, 0 }
 0x207   :  { %337 = shalt.err (%p384_p9)  }
 0x208   :  { %339 = vsyncmov [#allocation3 + $0x7] }
 0x20b   :  { %s340_s13 = vpop.sfrf %339 }
 0x20c   :  { %p385_p10 = scmp.ne.s32.totalorder %s340_s13, 0 }
 0x20e   :  { %344 = shalt.err (%p385_p10)  }

</bundles_post_ra>
